<compile_context>
chip_gen: v7x
topology: tpu7x:2x2x1
jax: 0.10.0
libtpu: 0.0.40
codegen_flags: <defaults>
</compile_context>

<pallas_src>
import jax
import jax.numpy as jnp
import numpy as np
from jax.experimental import pallas as pl
from jax.experimental.pallas import tpu as pltpu


def _rnn_kernel(x_ref, wwt_ref, wb_ref, uwt_ref, ub_ref,   # inputs
                o_ref, t_ref):                             # outputs
    SB, E = x_ref.shape          # x is laid out step-major: (S*B, E)
    H = uwt_ref.shape[1]
    B = t_ref.shape[0]
    S = SB // B

    # Load everything once (tiny: all of it fits a handful of vregs).
    x = x_ref[...]            # (S*B, E)  step-major
    wwt = wwt_ref[...]        # (E, H)    = W_w.T
    wb = wb_ref[...]          # (1, H)
    uwt = uwt_ref[...]        # (H, H)    = U_w.T
    ub = ub_ref[...]          # (1, H)

    # Hoisted input projection: one MXU matmul covers every timestep (the W branch
    # is independent of the recurrent state).  Fold in the bias and the 0.2 blend
    # factor once instead of once per step.
    h_all = (jnp.dot(x, wwt, preferred_element_type=jnp.float32) + wb) * 0.2   # (S*B, H)

    t = jnp.zeros((B, H), jnp.float32)
    outs = []
    # S is small and static -> fully unrolled recurrence, visible to the scheduler.
    for i in range(S):
        h_ = h_all[i * B:(i + 1) * B, :] + t * 0.8          # static contiguous slice
        h__ = jnp.tanh(h_)                                  # EUP
        t = jnp.dot(h__, uwt, preferred_element_type=jnp.float32) + ub
        outs.append(t)

    # Single lane-dense store of all per-step outputs: (B, S*H), S*H multiple of 128.
    o_ref[...] = jnp.concatenate(outs, axis=1)
    # Final recurrent state written once, after the last step.
    t_ref[...] = t


def rnn_forward(x, W_w, W_b, U_w, U_b):
    """x: (B, S, E) float32. Returns (O: (B, S, H), t: (B, H))."""
    B, S, E = x.shape
    H = W_w.shape[0]
    # The PyTorch module only works when embedding_num == hidden_num (U consumes h__ of width H).
    assert E == H and U_w.shape == (H, E), "RNN_Model requires embedding_num == hidden_num"

    # Step-major layout so each timestep is a contiguous sublane slice in the kernel.
    # x is ~2 KiB, so this wrapper-side transpose+reshape is negligible.
    x_sb = jnp.transpose(x, (1, 0, 2)).reshape(S * B, E)

    # Pre-transpose weights once in the wrapper so the kernel never transposes.
    W_wT = W_w.T                      # (E, H)
    U_wT = U_w.T                      # (H, H)
    wb2 = W_b.reshape(1, H)
    ub2 = U_b.reshape(1, H)

    O_flat, t_final = pl.pallas_call(
        _rnn_kernel,
        out_shape=(
            jax.ShapeDtypeStruct((B, S * H), jnp.float32),   # lane-dense O slab
            jax.ShapeDtypeStruct((B, H), jnp.float32),       # final t
        ),
        in_specs=[pl.BlockSpec(memory_space=pltpu.MemorySpace.VMEM)] * 5,
        out_specs=(
            pl.BlockSpec(memory_space=pltpu.MemorySpace.VMEM),
            pl.BlockSpec(memory_space=pltpu.MemorySpace.VMEM),
        ),
    )(x_sb, W_wT, wb2, U_wT, ub2)

    # Cheap contiguous reshape back to (B, S, H); no transpose involved.
    return O_flat.reshape(B, S, H), t_final


def _reference(x, W_w, W_b, U_w, U_b):
    B, S, E = x.shape
    H = W_w.shape[0]
    t = jnp.zeros((B, H), jnp.float32)
    outs = []
    for i in range(S):
        h = x[:, i] @ W_w.T + W_b
        h_ = h * 0.2 + t * 0.8
        h__ = jnp.tanh(h_)
        t = h__ @ U_w.T + U_b
        outs.append(t)
    return jnp.stack(outs, axis=1), t


if __name__ == "__main__":
    # embedding_num must equal hidden_num for the PyTorch module to run (U takes h__).
    B, S, E = 2, 8, 32
    H = 32

    key = jax.random.PRNGKey(0)
    kx, kw, kwb, ku, kub, kv, kvb = jax.random.split(key, 7)

    x = jax.random.normal(kx, (B, S, E), dtype=jnp.float32)

    # Deterministic parameter init (mimics nn.Linear uniform(-1/sqrt(fan_in), ...)).
    bound = 1.0 / np.sqrt(E)
    W_w = jax.random.uniform(kw, (H, E), jnp.float32, -bound, bound)
    W_b = jax.random.uniform(kwb, (H,), jnp.float32, -bound, bound)
    U_w = jax.random.uniform(ku, (H, E), jnp.float32, -bound, bound)
    U_b = jax.random.uniform(kub, (H,), jnp.float32, -bound, bound)
    # V linear is defined in __init__ but never used in forward; created for parity.
    V_w = jax.random.uniform(kv, (H, E), jnp.float32, -bound, bound)
    V_b = jax.random.uniform(kvb, (H,), jnp.float32, -bound, bound)
    del V_w, V_b  # unused, matching the PyTorch forward

    O, t = rnn_forward(x, W_w, W_b, U_w, U_b)
    jax.block_until_ready((O, t))

    O_ref, t_ref = _reference(x, W_w, W_b, U_w, U_b)
    assert O.shape == (B, S, H) and t.shape == (B, H)
    np.testing.assert_allclose(np.asarray(O), np.asarray(O_ref), rtol=1e-5, atol=1e-5)
    np.testing.assert_allclose(np.asarray(t), np.asarray(t_ref), rtol=1e-5, atol=1e-5)

    print("KERNEL_OK")
</pallas_src>

<mosaic_0001>
module attributes {stable_mosaic.version = 11 : i64} {
  func.func @_rnn_kernel(%arg0: memref<16x32xf32, #tpu.memory_space<vmem>>, %arg1: memref<32x32xf32, #tpu.memory_space<vmem>>, %arg2: memref<1x32xf32, #tpu.memory_space<vmem>>, %arg3: memref<32x32xf32, #tpu.memory_space<vmem>>, %arg4: memref<1x32xf32, #tpu.memory_space<vmem>>, %arg5: memref<2x256xf32, #tpu.memory_space<vmem>>, %arg6: memref<2x32xf32, #tpu.memory_space<vmem>>) attributes {dimension_semantics = [], scalar_prefetch = 0 : i64, scratch_operands = 0 : i64, tpu.core_type = #tpu.core_type<tc>} {
    %c0 = arith.constant 0 : index
    %c0_0 = arith.constant 0 : index
    %0 = vector.load %arg0[%c0, %c0_0] : memref<16x32xf32, #tpu.memory_space<vmem>>, vector<16x32xf32>
    %c0_1 = arith.constant 0 : index
    %c0_2 = arith.constant 0 : index
    %1 = vector.load %arg1[%c0_1, %c0_2] : memref<32x32xf32, #tpu.memory_space<vmem>>, vector<32x32xf32>
    %c0_3 = arith.constant 0 : index
    %c0_4 = arith.constant 0 : index
    %2 = vector.load %arg2[%c0_3, %c0_4] : memref<1x32xf32, #tpu.memory_space<vmem>>, vector<1x32xf32>
    %c0_5 = arith.constant 0 : index
    %c0_6 = arith.constant 0 : index
    %3 = vector.load %arg3[%c0_5, %c0_6] : memref<32x32xf32, #tpu.memory_space<vmem>>, vector<32x32xf32>
    %c0_7 = arith.constant 0 : index
    %c0_8 = arith.constant 0 : index
    %4 = vector.load %arg4[%c0_7, %c0_8] : memref<1x32xf32, #tpu.memory_space<vmem>>, vector<1x32xf32>
    %cst = arith.constant dense<0.000000e+00> : vector<16x32xf32>
    %5 = tpu.matmul %0, %1, %cst {dimension_numbers = #tpu.dot_dimension_numbers<[1], [0], [0], [1], [0, 0, 1, 1], [], []>} : vector<16x32xf32>, vector<32x32xf32>, vector<16x32xf32> -> vector<16x32xf32>
    %6 = vector.broadcast %2 : vector<1x32xf32> to vector<16x32xf32>
    %7 = arith.addf %5, %6 : vector<16x32xf32>
    %cst_9 = arith.constant 2.000000e-01 : f32
    %8 = vector.broadcast %cst_9 : f32 to vector<16x32xf32>
    %9 = arith.mulf %7, %8 : vector<16x32xf32>
    %cst_10 = arith.constant 0.000000e+00 : f32
    %10 = vector.broadcast %cst_10 : f32 to vector<2x32xf32>
    %11 = vector.extract_strided_slice %9 {offsets = [0, 0], sizes = [2, 32], strides = [1, 1]} : vector<16x32xf32> to vector<2x32xf32>
    %cst_11 = arith.constant 8.000000e-01 : f32
    %12 = vector.broadcast %cst_11 : f32 to vector<2x32xf32>
    %13 = arith.mulf %10, %12 : vector<2x32xf32>
    %14 = arith.addf %11, %13 : vector<2x32xf32>
    %15 = math.tanh %14 : vector<2x32xf32>
    %cst_12 = arith.constant dense<0.000000e+00> : vector<2x32xf32>
    %16 = tpu.matmul %15, %3, %cst_12 {dimension_numbers = #tpu.dot_dimension_numbers<[1], [0], [0], [1], [0, 0, 1, 1], [], []>} : vector<2x32xf32>, vector<32x32xf32>, vector<2x32xf32> -> vector<2x32xf32>
    %17 = vector.broadcast %4 : vector<1x32xf32> to vector<2x32xf32>
    %18 = arith.addf %16, %17 : vector<2x32xf32>
    %19 = vector.extract_strided_slice %9 {offsets = [2, 0], sizes = [2, 32], strides = [1, 1]} : vector<16x32xf32> to vector<2x32xf32>
    %cst_13 = arith.constant 8.000000e-01 : f32
    %20 = vector.broadcast %cst_13 : f32 to vector<2x32xf32>
    %21 = arith.mulf %18, %20 : vector<2x32xf32>
    %22 = arith.addf %19, %21 : vector<2x32xf32>
    %23 = math.tanh %22 : vector<2x32xf32>
    %cst_14 = arith.constant dense<0.000000e+00> : vector<2x32xf32>
    %24 = tpu.matmul %23, %3, %cst_14 {dimension_numbers = #tpu.dot_dimension_numbers<[1], [0], [0], [1], [0, 0, 1, 1], [], []>} : vector<2x32xf32>, vector<32x32xf32>, vector<2x32xf32> -> vector<2x32xf32>
    %25 = vector.broadcast %4 : vector<1x32xf32> to vector<2x32xf32>
    %26 = arith.addf %24, %25 : vector<2x32xf32>
    %27 = vector.extract_strided_slice %9 {offsets = [4, 0], sizes = [2, 32], strides = [1, 1]} : vector<16x32xf32> to vector<2x32xf32>
    %cst_15 = arith.constant 8.000000e-01 : f32
    %28 = vector.broadcast %cst_15 : f32 to vector<2x32xf32>
    %29 = arith.mulf %26, %28 : vector<2x32xf32>
    %30 = arith.addf %27, %29 : vector<2x32xf32>
    %31 = math.tanh %30 : vector<2x32xf32>
    %cst_16 = arith.constant dense<0.000000e+00> : vector<2x32xf32>
    %32 = tpu.matmul %31, %3, %cst_16 {dimension_numbers = #tpu.dot_dimension_numbers<[1], [0], [0], [1], [0, 0, 1, 1], [], []>} : vector<2x32xf32>, vector<32x32xf32>, vector<2x32xf32> -> vector<2x32xf32>
    %33 = vector.broadcast %4 : vector<1x32xf32> to vector<2x32xf32>
    %34 = arith.addf %32, %33 : vector<2x32xf32>
    %35 = vector.extract_strided_slice %9 {offsets = [6, 0], sizes = [2, 32], strides = [1, 1]} : vector<16x32xf32> to vector<2x32xf32>
    %cst_17 = arith.constant 8.000000e-01 : f32
    %36 = vector.broadcast %cst_17 : f32 to vector<2x32xf32>
    %37 = arith.mulf %34, %36 : vector<2x32xf32>
    %38 = arith.addf %35, %37 : vector<2x32xf32>
    %39 = math.tanh %38 : vector<2x32xf32>
    %cst_18 = arith.constant dense<0.000000e+00> : vector<2x32xf32>
    %40 = tpu.matmul %39, %3, %cst_18 {dimension_numbers = #tpu.dot_dimension_numbers<[1], [0], [0], [1], [0, 0, 1, 1], [], []>} : vector<2x32xf32>, vector<32x32xf32>, vector<2x32xf32> -> vector<2x32xf32>
    %41 = vector.broadcast %4 : vector<1x32xf32> to vector<2x32xf32>
    %42 = arith.addf %40, %41 : vector<2x32xf32>
    %43 = vector.extract_strided_slice %9 {offsets = [8, 0], sizes = [2, 32], strides = [1, 1]} : vector<16x32xf32> to vector<2x32xf32>
    %cst_19 = arith.constant 8.000000e-01 : f32
    %44 = vector.broadcast %cst_19 : f32 to vector<2x32xf32>
    %45 = arith.mulf %42, %44 : vector<2x32xf32>
    %46 = arith.addf %43, %45 : vector<2x32xf32>
    %47 = math.tanh %46 : vector<2x32xf32>
    %cst_20 = arith.constant dense<0.000000e+00> : vector<2x32xf32>
    %48 = tpu.matmul %47, %3, %cst_20 {dimension_numbers = #tpu.dot_dimension_numbers<[1], [0], [0], [1], [0, 0, 1, 1], [], []>} : vector<2x32xf32>, vector<32x32xf32>, vector<2x32xf32> -> vector<2x32xf32>
    %49 = vector.broadcast %4 : vector<1x32xf32> to vector<2x32xf32>
    %50 = arith.addf %48, %49 : vector<2x32xf32>
    %51 = vector.extract_strided_slice %9 {offsets = [10, 0], sizes = [2, 32], strides = [1, 1]} : vector<16x32xf32> to vector<2x32xf32>
    %cst_21 = arith.constant 8.000000e-01 : f32
    %52 = vector.broadcast %cst_21 : f32 to vector<2x32xf32>
    %53 = arith.mulf %50, %52 : vector<2x32xf32>
    %54 = arith.addf %51, %53 : vector<2x32xf32>
    %55 = math.tanh %54 : vector<2x32xf32>
    %cst_22 = arith.constant dense<0.000000e+00> : vector<2x32xf32>
    %56 = tpu.matmul %55, %3, %cst_22 {dimension_numbers = #tpu.dot_dimension_numbers<[1], [0], [0], [1], [0, 0, 1, 1], [], []>} : vector<2x32xf32>, vector<32x32xf32>, vector<2x32xf32> -> vector<2x32xf32>
    %57 = vector.broadcast %4 : vector<1x32xf32> to vector<2x32xf32>
    %58 = arith.addf %56, %57 : vector<2x32xf32>
    %59 = vector.extract_strided_slice %9 {offsets = [12, 0], sizes = [2, 32], strides = [1, 1]} : vector<16x32xf32> to vector<2x32xf32>
    %cst_23 = arith.constant 8.000000e-01 : f32
    %60 = vector.broadcast %cst_23 : f32 to vector<2x32xf32>
    %61 = arith.mulf %58, %60 : vector<2x32xf32>
    %62 = arith.addf %59, %61 : vector<2x32xf32>
    %63 = math.tanh %62 : vector<2x32xf32>
    %cst_24 = arith.constant dense<0.000000e+00> : vector<2x32xf32>
    %64 = tpu.matmul %63, %3, %cst_24 {dimension_numbers = #tpu.dot_dimension_numbers<[1], [0], [0], [1], [0, 0, 1, 1], [], []>} : vector<2x32xf32>, vector<32x32xf32>, vector<2x32xf32> -> vector<2x32xf32>
    %65 = vector.broadcast %4 : vector<1x32xf32> to vector<2x32xf32>
    %66 = arith.addf %64, %65 : vector<2x32xf32>
    %67 = vector.extract_strided_slice %9 {offsets = [14, 0], sizes = [2, 32], strides = [1, 1]} : vector<16x32xf32> to vector<2x32xf32>
    %cst_25 = arith.constant 8.000000e-01 : f32
    %68 = vector.broadcast %cst_25 : f32 to vector<2x32xf32>
    %69 = arith.mulf %66, %68 : vector<2x32xf32>
    %70 = arith.addf %67, %69 : vector<2x32xf32>
    %71 = math.tanh %70 : vector<2x32xf32>
    %cst_26 = arith.constant dense<0.000000e+00> : vector<2x32xf32>
    %72 = tpu.matmul %71, %3, %cst_26 {dimension_numbers = #tpu.dot_dimension_numbers<[1], [0], [0], [1], [0, 0, 1, 1], [], []>} : vector<2x32xf32>, vector<32x32xf32>, vector<2x32xf32> -> vector<2x32xf32>
    %73 = vector.broadcast %4 : vector<1x32xf32> to vector<2x32xf32>
    %74 = arith.addf %72, %73 : vector<2x32xf32>
    %75 = tpu.concatenate %18, %26, %34, %42, %50, %58, %66, %74 in 1 : vector<2x32xf32>, vector<2x32xf32>, vector<2x32xf32>, vector<2x32xf32>, vector<2x32xf32>, vector<2x32xf32>, vector<2x32xf32>, vector<2x32xf32> -> vector<2x256xf32>
    %c0_27 = arith.constant 0 : index
    %c0_28 = arith.constant 0 : index
    %76 = vector.load %arg5[%c0_27, %c0_28] : memref<2x256xf32, #tpu.memory_space<vmem>>, vector<2x256xf32>
    tpu.vector_store %arg5[%c0_27, %c0_28], %75 {strides = array<i32>} : memref<2x256xf32, #tpu.memory_space<vmem>>, vector<2x256xf32>,
    %c0_29 = arith.constant 0 : index
    %c0_30 = arith.constant 0 : index
    %77 = vector.load %arg6[%c0_29, %c0_30] : memref<2x32xf32, #tpu.memory_space<vmem>>, vector<2x32xf32>
    tpu.vector_store %arg6[%c0_29, %c0_30], %74 {strides = array<i32>} : memref<2x32xf32, #tpu.memory_space<vmem>>, vector<2x32xf32>,
    return
  }
}

</mosaic_0001>

<bundles_post_ra>
// kernel: tpu_custom_call.1
= control target key start
LH: loop header
LB: loop body
LE: loop exit
PB: predicated region body
PF: predicated region fallthrough
CT: control target
= control target key end

     0   :  { %12 = vsyncpa [#allocation3], 0  ;;  %s1460_s0 = inlined_call_operand.hbm [shape: f32[16,32], index: 0, kind: input, shape index: {}]   ;;  %s1461_s1 = inlined_call_operand.hbm [shape: f32[32,32], index: 1, kind: input, shape index: {}]   ;;  %s1462_s2 = inlined_call_operand.vmem [shape: f32[1,32], index: 2, kind: input, shape index: {}]   ;;  %s1463_s3 = inlined_call_operand.hbm [shape: f32[32,32], index: 3, kind: input, shape index: {}]   ;;  %s1464_s4 = inlined_call_operand.vmem [shape: f32[1,32], index: 4, kind: input, shape index: {}]   ;;  %s1465_s5 = inlined_call_operand.hbm [shape: f32[2,256], index: 5, kind: output, shape index: {0}]   ;;  %s1466_s6 = inlined_call_operand.hbm [shape: f32[2,32], index: 6, kind: output, shape index: {1}]  }
   0x1   :  { %13 = vsyncpa [#allocation6], 0 }
   0x2   :  { %14 = vsyncpa [#allocation4], 0 }
   0x3   :  { %15 = vsyncpa [#allocation10], 0  ;;  %s1241_s21 = smov [#allocation5]   ;;  %s1242_s23 = smov [#allocation2]  }
   0x4   :  { %s33_s22 = sshll.u32 %s1241_s21, 4  ;;  %s21_s24 = sshll.u32 %s1242_s23, 4  ;;  %s34_s22 = int_to_ptr.vmem [resolvable:$true] %s33_s22  ;;  %s1289_s24 = int_to_ptr.vmem [resolvable:$true] %s21_s24 }
   0x5   :  { %s1123_s27 = scalar_lea.hbm %s1461_s1, 512 }
   0x6   :  { %p1124_p0 = scmp.ne.s32.totalorder %s1461_s1, %s1123_s27  ;;  %p1127_p1 = scmp.lt.u32.totalorder %s1123_s27, %s1461_s1 }
   0x8   :  { %p1129_p2 = pnand %p1127_p1, %p1124_p0 }
   0xa   :  { %1132 = shalt.err (!%p1129_p2)
}
   0xb   :  { %s1133_s8 = scalar_lea.vmem %s34_s22, 512  ;;  %p1138_p4 = scmp.lt.s32.totalorder %s34_s22, %s34_s22 }
   0xc   :  { %p1134_p3 = scmp.ne.s32.totalorder %s34_s22, %s1133_s8  ;;  %p1139_p5 = scmp.lt.s32.totalorder %s1133_s8, %s1133_s8 }
   0xe   :  { %p1140_p6 = por %p1139_p5, %p1138_p4 }
  0x10   :  { %p1141_p7 = pnand %p1140_p6, %p1134_p3 }
  0x12   :  { %1144 = shalt.err (!%p1141_p7)
}
  0x13   :  { %s1243_s9 = smov 128   ;;  %s1244_s10 = smov 8  }
  0x14   :  { %39 = dma.hbm_to_vmem [thread:$0]  %s1461_s1, 512, %s34_s22, [#allocation6], %s1243_s9, %s1243_s9, %s1244_s10  }
  0x15   :  { %s1145_s15 = scalar_lea.hbm %s1460_s0, 256 }
  0x16   :  { %p1146_p8 = scmp.ne.s32.totalorder %s1460_s0, %s1145_s15  ;;  %p1149_p9 = scmp.lt.u32.totalorder %s1145_s15, %s1460_s0 }
  0x18   :  { %p1151_p10 = pnand %p1149_p9, %p1146_p8 }
  0x1a   :  { %1154 = shalt.err (!%p1151_p10)
}
  0x1b   :  { %s1155_s20 = scalar_lea.vmem %s1289_s24, 256  ;;  %p1160_p12 = scmp.lt.s32.totalorder %s1289_s24, %s1289_s24 }
  0x1c   :  { %p1156_p11 = scmp.ne.s32.totalorder %s1289_s24, %s1155_s20  ;;  %p1161_p13 = scmp.lt.s32.totalorder %s1155_s20, %s1155_s20 }
  0x1e   :  { %p1162_p0 = por %p1161_p13, %p1160_p12 }
  0x20   :  { %p1163_p1 = pnand %p1162_p0, %p1156_p11 }
  0x22   :  { %1166 = shalt.err (!%p1163_p1)
}
  0x23   :  { %27 = dma.hbm_to_vmem [thread:$0]  %s1460_s0, 256, %s1289_s24, [#allocation3], %s1243_s9, %s1243_s9, %s1244_s10  }
  0x24   :  { %s1245_s22 = smov [#allocation7]   ;;  %s1167_s27 = scalar_lea.hbm %s1463_s3, 512 }
  0x25   :  { %s47_s23 = sshll.u32 %s1245_s22, 4  ;;  %p1168_p2 = scmp.ne.s32.totalorder %s1463_s3, %s1167_s27  ;;  %s48_s23 = int_to_ptr.vmem [resolvable:$true] %s47_s23 }
  0x26   :  { %p1171_p3 = scmp.lt.u32.totalorder %s1167_s27, %s1463_s3 }
  0x28   :  { %p1173_p4 = pnand %p1171_p3, %p1168_p2 }
  0x2a   :  { %1176 = shalt.err (!%p1173_p4)
}
  0x2b   :  { %s1177_s8 = scalar_lea.vmem %s48_s23, 512  ;;  %p1182_p6 = scmp.lt.s32.totalorder %s48_s23, %s48_s23 }
  0x2c   :  { %p1178_p5 = scmp.ne.s32.totalorder %s48_s23, %s1177_s8  ;;  %p1183_p7 = scmp.lt.s32.totalorder %s1177_s8, %s1177_s8 }
  0x2e   :  { %p1184_p8 = por %p1183_p7, %p1182_p6 }
  0x30   :  { %p1185_p9 = pnand %p1184_p8, %p1178_p5 }
  0x32   :  { %1188 = shalt.err (!%p1185_p9)
}
  0x33   :  { %53 = dma.hbm_to_vmem [thread:$0]  %s1463_s3, 512, %s48_s23, [#allocation6], %s1243_s9, %s1243_s9, %s1244_s10  }
  0x34   :  { %1233 = dma.done.wait [#allocation3], 256  }
  0x35   :  { %1234 = vsyncadd [#allocation3], 4294967040 }
  0x36   :  { %1235 = dma.done.wait [#allocation6], 1024  }
  0x37   :  { %1236 = vsyncadd [#allocation6], 4294966272  ;;  %vm83_vm0 = vcmask 261120   ;;  %v67_v0 = vld [vmem:[#allocation5] sm:$0xff]  ;;  %v68_v1 = vld [vmem:[#allocation5 + $0x8] sm:$0xff]  ;;  %v1246_v11 = vmov 0.0|0.0  }
  0x38   :  { %v69_v2 = vld [vmem:[#allocation5 + $0x10] sm:$0xff]  ;;  %v1038_v3 = vpack.c.bf16 %v68_v1, %v67_v0  ;;  %v70_v4 = vld [vmem:[#allocation5 + $0x18] sm:$0xff]  ;;  %v72_v8 = vld [vmem:[#allocation7] sm:$0xff]  ;;  %1046 = vmatprep.subr.bf16.mxu1 %v1246_v11  ;;  %vm1247_vm1 = vmmov 0   ;;  %v1248_v14 = vmov 0.0   ;;  %s1250_s11 = smov 64  }
  0x39   :  { %v65_v5 = vld [vmem:[#allocation2] sm:$0xff]  ;;  %v1042_v6 = vpack.c.bf16 %v70_v4, %v69_v2  ;;  %v66_v7 = vld [vmem:[#allocation2 + $0x8] sm:$0xff]  ;;  %v73_v9 = vld [vmem:[#allocation7 + $0x8] sm:$0xff]  ;;  %958 = vmatprep.mubr.msk.f32.mxu1 %vm1247_vm1, %v1248_v14  ;;  %s1251_s12 = smov 96   ;;  %s1252_s13 = smov [#allocation9]   ;;  %vm848_vm2 = vcmask 254976  }
  0x3a   :  { %947 = vmatprep.mubr.msk.f32.mxu0 %vm83_vm0, %v65_v5  ;;  %1039 = vmatprep.subr.bf16.mxu0 %v1038_v3  ;;  %v74_v10 = vld [vmem:[#allocation7 + $0x10] sm:$0xff]  ;;  %v1344_v12 = vpack.c.bf16 %v73_v9, %v72_v8  ;;  %v75_v13 = vld [vmem:[#allocation7 + $0x18] sm:$0xff]  ;;  %s866_s14 = sshll.u32 %s1252_s13, 4  ;;  %s867_s14 = int_to_ptr.vmem [resolvable:$true] %s866_s14 }
  0x3b   :  { %1041 = vmatpush3.bf16.msra.mxu0 %v1038_v3  ;;  %v1352_v15 = vpack.c.bf16 %v75_v13, %v74_v10  ;;  %v880_v16 = vld [vmem:[%s1462_s2] ss:$0 sm:$0xff]  ;;  %s1189_s15 = scalar_lea.vmem %s867_s14, 32  ;;  %p1194_p11 = scmp.lt.s32.totalorder %s867_s14, %s867_s14 }
  0x3c   :  { %1043 = vmatprep.subr.bf16.mxu0 %v1042_v6  ;;  %1048 = vmatpush3.bf16.msra.mxu1 %v1344_v12  ;;  %v1376_v23 = vld [vmem:[%s1464_s4] ss:$0 sm:$0xff]  ;;  %s1249_s4 = smov 32   ;;  %p1190_p10 = scmp.ne.s32.totalorder %s867_s14, %s1189_s15 }
  0x3d   :  { %1049 = vmatprep.subr.bf16.mxu1 %v1246_v11  ;;  %p1195_p12 = scmp.lt.s32.totalorder %s1189_s15, %s1189_s15 }
  0x3f   :  { %1045 = vmatpush3.bf16.msra.mxu0 %v1042_v6  ;;  %p1196_p13 = por %p1195_p12, %p1194_p11 }
  0x40   :  { %1052 = vmatprep.subr.bf16.mxu0 %v1246_v11  ;;  %1051 = vmatpush3.bf16.msra.mxu1 %v1352_v15 }
  0x41   :  { %1058 = vmatprep.subr.bf16.mxu1 %v1246_v11  ;;  %p1197_p0 = pnand %p1196_p13, %p1190_p10 }
  0x42   :  { %948 = vmatmul.mubr.msk.f32.vlgmr.msra.gmra.mrb[0].mxu0 %vm83_vm0, %v66_v7 }
  0x43   :  { %969 = vmatprep.mubr.msk.f32.mxu0 %vm1247_vm1, %v1248_v14  ;;  %1054 = vmatpush3.bf16.msra.mxu0 %v1344_v12 }
  0x44   :  { %1055 = vmatprep.subr.bf16.mxu0 %v1246_v11 }
  0x47   :  { %1057 = vmatpush3.bf16.msra.mxu0 %v1352_v15 }
  0x48   :  { %1064 = vmatprep.subr.bf16.mxu0 %v1246_v11 }
 0x115   :  { %v949_v17 = vpop.f32.mrb[0].mxu0 }
 0x116   :  { %v1364_v18 = vadd.f32 %v949_v17, %v880_v16  ;;  %v156_v19 = vpop.f32.mrb[1].mxu0 }
 0x117   :  { %v157_v20 = vadd.f32 %v880_v16, %v156_v19 }
 0x118   :  { %v166_v51 = vmul.f32 0.2, %v1364_v18 }
 0x119   :  { %v165_v21 = vmul.f32 0.2, %v157_v20 }
 0x11b   :  { %1107 = vtanh.f32 %v165_v21 }
 0x125   :  { %v1108_v22 = vpop.eup %1107 }
 0x126   :  { %959 = vmatmul.mubr.msk.f32.vlgmr.msra.gmra.mrb[0].mxu1 %vm83_vm0, %v1108_v22 }
 0x127   :  { %1060 = vmatpush3.bf16.msra.mxu1 %v1344_v12  ;;  %980 = vmatprep.mubr.msk.f32.mxu1 %vm1247_vm1, %v1248_v14 }
 0x128   :  { %1061 = vmatprep.subr.bf16.mxu1 %v1246_v11 }
 0x12b   :  { %1063 = vmatpush3.bf16.msra.mxu1 %v1352_v15 }
 0x12c   :  { %1070 = vmatprep.subr.bf16.mxu1 %v1246_v11 }
 0x1f9   :  { %v244_v24 = vpop.f32.mrb[0].mxu1 }
 0x1fa   :  { %v1379_v25 = vadd.f32 %v1376_v23, %v244_v24  ;;  %v960_v26 = vpop.f32.mrb[1].mxu1 }
 0x1fc   :  { %v248_v27 = vmul.f32 0.8, %v1379_v25 }
 0x1fe   :  { %v250_v28 = vrot.slane %v248_v27, 6 }
 0x200   :  { %v252_v29 = vadd.f32 %v250_v28, %v165_v21 }
 0x202   :  { %1109 = vtanh.f32 %v252_v29 }
 0x20c   :  { %v1110_v30 = vpop.eup %1109 }
 0x20d   :  { %v255_v31 = vrot.slane %v1110_v30, 2 }
 0x20f   :  { %970 = vmatmul.mubr.msk.f32.vlgmr.msra.gmra.mrb[2].mxu0 %vm83_vm0, %v255_v31 }
 0x210   :  { %1066 = vmatpush3.bf16.msra.mxu0 %v1344_v12  ;;  %991 = vmatprep.mubr.msk.f32.mxu0 %vm1247_vm1, %v1248_v14 }
 0x211   :  { %1067 = vmatprep.subr.bf16.mxu0 %v1246_v11 }
 0x214   :  { %1069 = vmatpush3.bf16.msra.mxu0 %v1352_v15 }
 0x215   :  { %1076 = vmatprep.subr.bf16.mxu0 %v1246_v11 }
 0x2e2   :  { %v324_v32 = vpop.f32.mrb[2].mxu0 }
 0x2e3   :  { %v325_v33 = vadd.f32 %v1376_v23, %v324_v32  ;;  %v971_v34 = vpop.f32.mrb[3].mxu0 }
 0x2e5   :  { %v328_v35 = vmul.f32 0.8, %v325_v33  ;;  %805 = vrot.lane.b32.xlu0 %v325_v33, %s1249_s4 }
 0x2e7   :  { %v330_v36 = vrot.slane %v328_v35, 4 }
 0x2e9   :  { %v332_v37 = vadd.f32 %v330_v36, %v165_v21 }
 0x2eb   :  { %1111 = vtanh.f32 %v332_v37 }
 0x2f5   :  { %v1112_v38 = vpop.eup %1111 }
 0x2f6   :  { %v335_v39 = vrot.slane %v1112_v38, 4 }
 0x2f8   :  { %981 = vmatmul.mubr.msk.f32.vlgmr.msra.gmra.mrb[2].mxu1 %vm83_vm0, %v335_v39 }
 0x2f9   :  { %1072 = vmatpush3.bf16.msra.mxu1 %v1344_v12  ;;  %1002 = vmatprep.mubr.msk.f32.mxu1 %vm1247_vm1, %v1248_v14 }
 0x2fa   :  { %1073 = vmatprep.subr.bf16.mxu1 %v1246_v11 }
 0x2fd   :  { %1075 = vmatpush3.bf16.msra.mxu1 %v1352_v15 }
 0x2fe   :  { %1082 = vmatprep.subr.bf16.mxu1 %v1246_v11 }
 0x3cb   :  { %v404_v40 = vpop.f32.mrb[2].mxu1 }
 0x3cc   :  { %v405_v41 = vadd.f32 %v1376_v23, %v404_v40  ;;  %v982_v42 = vpop.f32.mrb[3].mxu1 }
 0x3ce   :  { %v408_v43 = vmul.f32 0.8, %v405_v41  ;;  %809 = vrot.lane.b32.xlu1 %v405_v41, %s1250_s11 }
 0x3d0   :  { %v410_v44 = vrot.slane %v408_v43, 2 }
 0x3d2   :  { %v412_v45 = vadd.f32 %v410_v44, %v165_v21 }
 0x3d4   :  { %1113 = vtanh.f32 %v412_v45 }
 0x3de   :  { %v1114_v46 = vpop.eup %1113 }
 0x3df   :  { %v415_v47 = vrot.slane %v1114_v46, 6 }
 0x3e1   :  { %992 = vmatmul.mubr.msk.f32.vlgmr.msra.gmra.mrb[4].mxu0 %vm83_vm0, %v415_v47 }
 0x3e2   :  { %1078 = vmatpush3.bf16.msra.mxu0 %v1344_v12  ;;  %1013 = vmatprep.mubr.msk.f32.mxu0 %vm1247_vm1, %v1248_v14 }
 0x3e3   :  { %1079 = vmatprep.subr.bf16.mxu0 %v1246_v11 }
 0x3e6   :  { %1081 = vmatpush3.bf16.msra.mxu0 %v1352_v15 }
 0x3e7   :  { %1088 = vmatprep.subr.bf16.mxu0 %v1246_v11 }
 0x4b4   :  { %v484_v48 = vpop.f32.mrb[4].mxu0 }
 0x4b5   :  { %v485_v49 = vadd.f32 %v1376_v23, %v484_v48  ;;  %v993_v50 = vpop.f32.mrb[5].mxu0 }
 0x4b7   :  { %v488_v52 = vmul.f32 0.8, %v485_v49 }
 0x4b9   :  { %v489_v53 = vadd.f32 %v488_v52, %v166_v51 }
 0x4bb   :  { %1115 = vtanh.f32 %v489_v53 }
 0x4c5   :  { %v1116_v54 = vpop.eup %1115 }
 0x4c6   :  { %1003 = vmatmul.mubr.msk.f32.vlgmr.msra.gmra.mrb[4].mxu1 %vm83_vm0, %v1116_v54 }
 0x4c7   :  { %1084 = vmatpush3.bf16.msra.mxu1 %v1344_v12  ;;  %1024 = vmatprep.mubr.msk.f32.mxu1 %vm1247_vm1, %v1248_v14 }
 0x4c8   :  { %1085 = vmatprep.subr.bf16.mxu1 %v1246_v11 }
 0x4cb   :  { %1087 = vmatpush3.bf16.msra.mxu1 %v1352_v15 }
 0x599   :  { %v560_v55 = vpop.f32.mrb[4].mxu1 }
 0x59a   :  { %v1416_v56 = vadd.f32 %v1376_v23, %v560_v55  ;;  %v1004_v57 = vpop.f32.mrb[5].mxu1 }
 0x59c   :  { %v564_v58 = vmul.f32 0.8, %v1416_v56 }
 0x59e   :  { %v566_v59 = vrot.slane %v564_v58, 6 }
 0x5a0   :  { %v568_v60 = vadd.f32 %v566_v59, %v166_v51 }
 0x5a2   :  { %1117 = vtanh.f32 %v568_v60 }
 0x5ac   :  { %v1118_v61 = vpop.eup %1117 }
 0x5ad   :  { %v571_v62 = vrot.slane %v1118_v61, 2 }
 0x5af   :  { %1014 = vmatmul.mubr.msk.f32.vlgmr.msra.gmra.mrb[6].mxu0 %vm83_vm0, %v571_v62 }
 0x5b0   :  { %1090 = vmatpush3.bf16.msra.mxu0 %v1344_v12  ;;  %1035 = vmatprep.mubr.msk.f32.mxu0 %vm1247_vm1, %v1248_v14 }
 0x5b1   :  { %1091 = vmatprep.subr.bf16.mxu0 %v1246_v11 }
 0x5b4   :  { %1093 = vmatpush3.bf16.msra.mxu0 %v1352_v15 }
 0x682   :  { %v640_v63 = vpop.f32.mrb[6].mxu0 }
 0x683   :  { %v641_v0 = vadd.f32 %v1376_v23, %v640_v63  ;;  %v1015_v1 = vpop.f32.mrb[7].mxu0 }
 0x685   :  { %v644_v2 = vmul.f32 0.8, %v641_v0  ;;  %817 = vrot.lane.b32.xlu0 %v641_v0, %s1249_s4 }
 0x687   :  { %v646_v3 = vrot.slane %v644_v2, 4 }
 0x689   :  { %v648_v4 = vadd.f32 %v646_v3, %v166_v51  ;;  %813 = vrot.lane.b32.xlu0 %v485_v49, %s1251_s12 }
 0x68b   :  { %1119 = vtanh.f32 %v648_v4 }
 0x695   :  { %v1120_v5 = vpop.eup %1119 }
 0x696   :  { %v651_v6 = vrot.slane %v1120_v5, 4 }
 0x698   :  { %1025 = vmatmul.mubr.msk.f32.vlgmr.msra.gmra.mrb[6].mxu1 %vm83_vm0, %v651_v6 }
 0x76b   :  { %v720_v7 = vpop.f32.mrb[6].mxu1 }
 0x76c   :  { %v721_v8 = vadd.f32 %v1376_v23, %v720_v7  ;;  %v1026_v9 = vpop.f32.mrb[7].mxu1 }
 0x76e   :  { %v724_v10 = vmul.f32 0.8, %v721_v8  ;;  %821 = vrot.lane.b32.xlu1 %v721_v8, %s1250_s11 }
 0x770   :  { %v726_v11 = vrot.slane %v724_v10, 2 }
 0x772   :  { %v728_v12 = vadd.f32 %v726_v11, %v166_v51 }
 0x774   :  { %1121 = vtanh.f32 %v728_v12 }
 0x77e   :  { %v1122_v13 = vpop.eup %1121 }
 0x77f   :  { %v731_v14 = vrot.slane %v1122_v13, 6 }
 0x781   :  { %1036 = vmatmul.mubr.msk.f32.vlgmr.msra.gmra.mrb[8].mxu0 %vm83_vm0, %v731_v14 }
 0x854   :  { %v800_v15 = vpop.f32.mrb[8].mxu0 }
 0x855   :  { %v801_v16 = vadd.f32 %v1376_v23, %v800_v15  ;;  %v1037_v17 = vpop.f32.mrb[9].mxu0 }
 0x857   :  { %825 = vrot.lane.b32.xlu1 %v801_v16, %s1251_s12  ;;  %849 = vst.msk [vmem:[#allocation9] sm:$0x3] %vm848_vm2, %v801_v16 }
 0x858   :  { %1200 = shalt.err (!%p1197_p0)
}
 0x859   :  { %s1201_s18 = scalar_lea.hbm %s1466_s6, 32 }
 0x85a   :  { %p1202_p1 = scmp.ne.s32.totalorder %s1466_s6, %s1201_s18  ;;  %p1205_p2 = scmp.lt.u32.totalorder %s1201_s18, %s1466_s6 }
 0x85c   :  { %p1207_p3 = pnand %p1205_p2, %p1202_p1 }
 0x85e   :  { %1210 = shalt.err (!%p1207_p3)
}
 0x85f   :  { %869 = dma.vmem_to_hbm [thread:$0]  %s867_s14, 32, %s1466_s6, [#allocation10]   ;;  %v806_v18 = vpop.permute.xlu0 %805  ;;  %v810_v19 = vpop.permute.xlu1 %809  ;;  %vm829_vm3 = vcmask 523264   ;;  %vm831_vm4 = vcmask 785408  }
 0x860   :  { %v828_v23 = vsel %vm83_vm0, %v1379_v25, %v806_v18  ;;  %s1253_s25 = smov [#allocation8]  }
 0x861   :  { %s856_s26 = sshll.u32 %s1253_s25, 4  ;;  %v830_v26 = vsel %vm829_vm3, %v828_v23, %v810_v19  ;;  %s857_s26 = int_to_ptr.vmem [resolvable:$true] %s856_s26 }
 0x862   :  { %s1211_s6 = scalar_lea.vmem %s857_s26, 64  ;;  %p1216_p5 = scmp.lt.s32.totalorder %s857_s26, %s857_s26 }
 0x863   :  { %v818_v20 = vpop.permute.xlu0 %817  ;;  %v822_v21 = vpop.permute.xlu1 %821  ;;  %p1212_p4 = scmp.ne.s32.totalorder %s857_s26, %s1211_s6  ;;  %p1217_p6 = scmp.lt.s32.totalorder %s1211_s6, %s1211_s6 }
 0x864   :  { %v833_v24 = vsel %vm83_vm0, %v1416_v56, %v818_v20 }
 0x865   :  { %v834_v27 = vsel %vm829_vm3, %v833_v24, %v822_v21  ;;  %p1218_p7 = por %p1217_p6, %p1216_p5 }
 0x867   :  { %v814_v22 = vpop.permute.xlu0 %813  ;;  %p1219_p8 = pnand %p1218_p7, %p1212_p4 }
 0x868   :  { %v832_v29 = vsel %vm831_vm4, %v830_v26, %v814_v22 }
 0x8c9   :  { %v826_v28 = vpop.permute.xlu1 %825 }
 0x8ca   :  { %v835_v30 = vsel %vm831_vm4, %v834_v27, %v826_v28 }
 0x8cb   :  { %v838_v31 = vcombine.low %v832_v29, %v835_v30 }
 0x8cd   :  { %892 = vst.sshfl [vmem:[#allocation8] sm:$0x33 pattern:$0x76325410] %v838_v31 }
 0x8ce   :  { %1222 = shalt.err (!%p1219_p8)
}
 0x8cf   :  { %s1223_s29 = scalar_lea.hbm %s1465_s5, 64 }
 0x8d0   :  { %p1224_p9 = scmp.ne.s32.totalorder %s1465_s5, %s1223_s29  ;;  %p1227_p10 = scmp.lt.u32.totalorder %s1223_s29, %s1465_s5 }
 0x8d2   :  { %p1229_p11 = pnand %p1227_p10, %p1224_p9 }
 0x8d4   :  { %1232 = shalt.err (!%p1229_p11)
}
 0x8d5   :  { %859 = dma.vmem_to_hbm [thread:$0]  %s857_s26, 64, %s1465_s5, [#allocation4]  }
 0x8d6   :  { %1237 = dma.done.wait [#allocation4], 64  }
 0x8d7   :  { %1238 = vsyncadd [#allocation4], 4294967232 }
 0x8d8   :  { %1239 = dma.done.wait [#allocation10], 32  }
 0x8d9   :  { %1240 = vsyncadd [#allocation10], 4294967264 }
 0x8da   :  { %876 = vsyncpa [#allocation3], 1 }
 0x8db   :  { %877 = vsyncpa [#allocation6], 1 }
 0x8dc   :  { %878 = vsyncpa [#allocation4], 1 }
 0x8dd   :  { %879 = vsyncpa [#allocation10], 1 }

</bundles_post_ra>
